<compile_context>
chip_gen: v5e
topology: v5e:2x2
jax: 0.10.0
libtpu: 0.0.40
codegen_flags: <defaults>
</compile_context>

<pallas_src>
import functools

import jax
import jax.numpy as jnp
from jax.experimental import pallas as pl
from jax.experimental.pallas import tpu as pltpu

LANE = 128
SUBLANE = 8


def _round_up(x, m):
    return ((x + m - 1) // m) * m


def _pick_tb(b_pad, max_tile=2048):
    """Pick a batch tile (multiple of 128) that divides b_pad, is <= max_tile,
    and yields >= 2 grid steps when the padded batch allows it (v7x megacore)."""
    n = b_pad // LANE
    min_steps = 2 if n >= 2 else 1
    for g in range(1, n + 1):          # ascending g -> largest acceptable tile
        if n % g:
            continue
        tb = b_pad // g
        if g >= min_steps and tb <= max_tile:
            return tb
    return LANE


# --------------------------------------------------------------------------
# Kernel: one batch tile through the whole (BN-folded) MLP, feature-major.
#   xT_ref : (d_in, tb)      activations have batch on the lane axis
#   wK_ref : (outK, inK)     transposed weights (bf16), bK_ref: (outK, 1) f32
#   o_ref  : (out_pad, tb)
# --------------------------------------------------------------------------
def mlp_kernel(xT_ref,
               w1_ref, b1_ref,
               w2_ref, b2_ref,
               w3_ref, b3_ref,
               o_ref):
    xT = xT_ref[...].astype(jnp.bfloat16)

    # Layer 1: Linear -> ReLU          (BN1 already folded into W2/b2)
    h = jnp.dot(w1_ref[...], xT, preferred_element_type=jnp.float32) + b1_ref[...]
    h = jnp.maximum(h, 0.0)

    # Layer 2: Linear -> ReLU          (BN2 already folded into W3/b3)
    h = jnp.dot(w2_ref[...], h.astype(jnp.bfloat16),
                preferred_element_type=jnp.float32) + b2_ref[...]
    h = jnp.maximum(h, 0.0)

    # Output Linear (only 8 sublanes of output -> tiny, lane-dense writeback)
    o_ref[...] = (jnp.dot(w3_ref[...], h.astype(jnp.bfloat16),
                          preferred_element_type=jnp.float32)
                  + b3_ref[...]).astype(o_ref.dtype)


# --------------------------------------------------------------------------
# Wrapper: batch-tiled pallas_call with resident weights.
# `out_dim` MUST be a static python int (bind it with functools.partial).
# --------------------------------------------------------------------------
def tabular_model_forward(x, fused, *, out_dim, max_tile=2048):
    x = x.astype(jnp.float32)
    B, d_in = x.shape
    h1p = fused["w1"].shape[0]          # w1: (h1p, d_in)
    h2p = fused["w2"].shape[0]          # w2: (h2p, h1p)
    op = fused["w3"].shape[0]           # w3: (op,  h2p)

    b_pad = _round_up(B, LANE)
    tb = _pick_tb(b_pad, max_tile=max_tile)
    grid = (b_pad // tb,)

    # Feature-major input: (d_in, b_pad), batch on the lane axis (zero-padded).
    xT = jnp.pad(x, ((0, b_pad - B), (0, 0))).T

    const = lambda i: (0, 0)
    in_specs = [
        pl.BlockSpec((d_in, tb), lambda i: (0, i)),     # streamed batch tile
        pl.BlockSpec((h1p, d_in), const),               # weights: VMEM-resident
        pl.BlockSpec((h1p, 1), const),
        pl.BlockSpec((h2p, h1p), const),
        pl.BlockSpec((h2p, 1), const),
        pl.BlockSpec((op, h2p), const),
        pl.BlockSpec((op, 1), const),
    ]
    out_specs = pl.BlockSpec((op, tb), lambda i: (0, i))

    flops = 2 * b_pad * (d_in * h1p + h1p * h2p + h2p * op)
    bytes_accessed = (
        xT.size * xT.dtype.itemsize
        + sum(fused[k].size * fused[k].dtype.itemsize
              for k in ("w1", "b1", "w2", "b2", "w3", "b3"))
        + op * b_pad * 4)

    outT = pl.pallas_call(
        mlp_kernel,
        out_shape=jax.ShapeDtypeStruct((op, b_pad), jnp.float32),
        grid=grid,
        in_specs=in_specs,
        out_specs=out_specs,
        compiler_params=pltpu.CompilerParams(
            dimension_semantics=("parallel",),          # megacore-shard batch axis
            vmem_limit_bytes=32 * 1024 * 1024),
        cost_estimate=pl.CostEstimate(
            flops=flops, transcendentals=0, bytes_accessed=bytes_accessed),
    )(xT, fused["w1"], fused["b1"], fused["w2"], fused["b2"],
      fused["w3"], fused["b3"])

    # Tiny (8, b_pad) slab -> slice + transpose back to (B, out_dim) is cheap.
    return outT[:out_dim, :B].T


# --------------------------------------------------------------------------
# Parameter prep: PyTorch-like init, BN folding, transpose + padding, bf16.
# --------------------------------------------------------------------------
def init_raw_params(key, input_dim, hidden_dims, output_dim):
    """Mimic nn.Linear init (U(+-1/sqrt(fan_in))) and non-trivial BN stats."""
    dims = [input_dim] + list(hidden_dims) + [output_dim]
    n_lin = len(dims) - 1
    keys = jax.random.split(key, 4 * n_lin)

    linears = []
    for i in range(n_lin):
        di, do = dims[i], dims[i + 1]
        bound = float(di) ** -0.5
        w = jax.random.uniform(keys[4 * i], (di, do), jnp.float32, -bound, bound)
        b = jax.random.uniform(keys[4 * i + 1], (do,), jnp.float32, -bound, bound)
        linears.append((w, b))

    bns = []
    for i, h in enumerate(hidden_dims):
        kg, kb = keys[4 * i + 2], keys[4 * i + 3]
        gamma = jax.random.uniform(kg, (h,), jnp.float32, 0.8, 1.2)
        beta = 0.1 * jax.random.normal(kb, (h,), jnp.float32)
        mean = 0.1 * jax.random.normal(jax.random.fold_in(kg, 7), (h,), jnp.float32)
        var = jax.random.uniform(jax.random.fold_in(kb, 11), (h,), jnp.float32, 0.5, 1.5)
        bns.append((gamma, beta, mean, var))

    return {"linears": linears, "bns": bns}


def fuse_and_pad(raw, eps=1e-5):
    """Fold eval-mode BN affines into the following Linear (exact for
    Linear->ReLU->BN order), transpose to feature-major, pad hidden dims to 128
    and the output dim to 8 sublanes, cast matmul weights to bf16."""
    (w1, b1), (w2, b2), (w3, b3) = raw["linears"]
    (g1, be1, m1, v1), (g2, be2, m2, v2) = raw["bns"]

    s1 = g1 / jnp.sqrt(v1 + eps)
    t1 = be1 - m1 * s1
    s2 = g2 / jnp.sqrt(v2 + eps)
    t2 = be2 - m2 * s2

    # BN is applied after ReLU, so folding it forward into the next Linear is exact.
    w2f = s1[:, None] * w2
    b2f = t1 @ w2 + b2
    w3f = s2[:, None] * w3
    b3f = t2 @ w3 + b3

    d_in = w1.shape[0]
    h1p = _round_up(w1.shape[1], LANE)
    h2p = _round_up(w2f.shape[1], LANE)
    op = _round_up(w3f.shape[1], SUBLANE)   # only 8 sublanes, not 128 lanes

    def prep(w, b, out_pad, in_pad):
        """(in, out) weight -> transposed, zero-padded (out_pad, in_pad)."""
        wt = w.T
        wt = jnp.pad(wt, ((0, out_pad - wt.shape[0]), (0, in_pad - wt.shape[1])))
        bp = jnp.pad(b, ((0, out_pad - b.shape[0]),)).reshape(-1, 1)
        return wt.astype(jnp.bfloat16), bp.astype(jnp.float32)

    w1p, b1p = prep(w1, b1, h1p, d_in)
    w2p, b2p = prep(w2f, b2f, h2p, h1p)
    w3p, b3p = prep(w3f, b3f, op, h2p)

    return dict(w1=w1p, b1=b1p, w2=w2p, b2=b2p, w3=w3p, b3=b3p)


# --------------------------------------------------------------------------
# References.
# --------------------------------------------------------------------------
def reference_bf16(x, fused, out_dim):
    """Same bf16-operand / f32-accumulate, feature-major math as the kernel."""
    xT = x.astype(jnp.float32).T.astype(jnp.bfloat16)
    h = jnp.dot(fused["w1"], xT, preferred_element_type=jnp.float32) + fused["b1"]
    h = jnp.maximum(h, 0.0)
    h = jnp.dot(fused["w2"], h.astype(jnp.bfloat16),
                preferred_element_type=jnp.float32) + fused["b2"]
    h = jnp.maximum(h, 0.0)
    o = jnp.dot(fused["w3"], h.astype(jnp.bfloat16),
                preferred_element_type=jnp.float32) + fused["b3"]
    return o[:out_dim, :].T


def reference_f32(x, raw, eps=1e-5):
    """Unfused, unpadded f32 reference matching the PyTorch module in eval mode."""
    h = x
    for (w, b), (g, be, m, v) in zip(raw["linears"][:-1], raw["bns"]):
        h = jnp.maximum(h @ w + b, 0.0)
        h = (h - m) / jnp.sqrt(v + eps) * g + be
    w, b = raw["linears"][-1]
    return h @ w + b


# --------------------------------------------------------------------------
if __name__ == "__main__":
    key = jax.random.PRNGKey(0)
    k_param, k_x = jax.random.split(key)

    batch = 256
    input_dim = 16
    hidden_dims = [64, 32]
    output_dim = 4

    raw = init_raw_params(k_param, input_dim, hidden_dims, output_dim)
    fused = fuse_and_pad(raw)
    x = jax.random.normal(k_x, (batch, input_dim), jnp.float32)

    # out_dim is a *static* kwarg (bound here, not part of the traced pytree).
    fwd = jax.jit(functools.partial(tabular_model_forward, out_dim=output_dim))
    out = jax.block_until_ready(fwd(x, fused))
    assert out.shape == (batch, output_dim)

    # Tight check vs. an identical bf16/f32-accumulate JAX reference.
    ref_b = reference_bf16(x, fused, output_dim)
    assert jnp.allclose(out, ref_b, atol=2e-2, rtol=2e-2), "mismatch vs bf16 reference"

    # Sanity check of the BN-fold + padding against the full-f32 module math.
    ref_f = reference_f32(x, raw)
    assert jnp.allclose(out, ref_f, atol=1e-1, rtol=1e-1), "mismatch vs f32 reference"

    print("KERNEL_OK")
</pallas_src>

<mosaic_0001>
module attributes {stable_mosaic.version = 11 : i64} {
  func.func @mlp_kernel(%arg0: i32, %arg1: memref<16x128xf32, #tpu.memory_space<vmem>>, %arg2: memref<128x16xbf16, #tpu.memory_space<vmem>>, %arg3: memref<128x1xf32, #tpu.memory_space<vmem>>, %arg4: memref<128x128xbf16, #tpu.memory_space<vmem>>, %arg5: memref<128x1xf32, #tpu.memory_space<vmem>>, %arg6: memref<8x128xbf16, #tpu.memory_space<vmem>>, %arg7: memref<8x1xf32, #tpu.memory_space<vmem>>, %arg8: memref<8x128xf32, #tpu.memory_space<vmem>>) attributes {dimension_semantics = [#tpu.dimension_semantics<parallel>], iteration_bounds = array<i64: 2>, scalar_prefetch = 0 : i64, scratch_operands = 0 : i64, tpu.core_type = #tpu.core_type<tc>, window_params = [{transform_indices = @transform_0, window_bounds = array<i64: 16, 128>}, {pipeline_mode = #tpu.pipeline_mode<synchronous>, transform_indices = @transform_1, window_bounds = array<i64: 128, 16>}, {pipeline_mode = #tpu.pipeline_mode<synchronous>, transform_indices = @transform_2, window_bounds = array<i64: 128, 1>}, {pipeline_mode = #tpu.pipeline_mode<synchronous>, transform_indices = @transform_3, window_bounds = array<i64: 128, 128>}, {pipeline_mode = #tpu.pipeline_mode<synchronous>, transform_indices = @transform_4, window_bounds = array<i64: 128, 1>}, {pipeline_mode = #tpu.pipeline_mode<synchronous>, transform_indices = @transform_5, window_bounds = array<i64: 8, 128>}, {pipeline_mode = #tpu.pipeline_mode<synchronous>, transform_indices = @transform_6, window_bounds = array<i64: 8, 1>}, {transform_indices = @transform_7, window_bounds = array<i64: 8, 128>}]} {
    %c0 = arith.constant 0 : index
    %c0_0 = arith.constant 0 : index
    %0 = vector.load %arg1[%c0, %c0_0] : memref<16x128xf32, #tpu.memory_space<vmem>>, vector<16x128xf32>
    %1 = arith.truncf %0 : vector<16x128xf32> to vector<16x128xbf16>
    %c0_1 = arith.constant 0 : index
    %c0_2 = arith.constant 0 : index
    %2 = vector.load %arg2[%c0_1, %c0_2] : memref<128x16xbf16, #tpu.memory_space<vmem>>, vector<128x16xbf16>
    %cst = arith.constant dense<0.000000e+00> : vector<128x128xf32>
    %3 = tpu.matmul %2, %1, %cst {dimension_numbers = #tpu.dot_dimension_numbers<[1], [0], [0], [1], [0, 0, 1, 1], [], []>} : vector<128x16xbf16>, vector<16x128xbf16>, vector<128x128xf32> -> vector<128x128xf32>
    %c0_3 = arith.constant 0 : index
    %c0_4 = arith.constant 0 : index
    %4 = vector.load %arg3[%c0_3, %c0_4] : memref<128x1xf32, #tpu.memory_space<vmem>>, vector<128x1xf32>
    %5 = vector.broadcast %4 : vector<128x1xf32> to vector<128x128xf32>
    %6 = arith.addf %3, %5 : vector<128x128xf32>
    %cst_5 = arith.constant 0.000000e+00 : f32
    %7 = vector.broadcast %cst_5 : f32 to vector<128x128xf32>
    %8 = arith.maximumf %6, %7 : vector<128x128xf32>
    %c0_6 = arith.constant 0 : index
    %c0_7 = arith.constant 0 : index
    %9 = vector.load %arg4[%c0_6, %c0_7] : memref<128x128xbf16, #tpu.memory_space<vmem>>, vector<128x128xbf16>
    %10 = arith.truncf %8 : vector<128x128xf32> to vector<128x128xbf16>
    %cst_8 = arith.constant dense<0.000000e+00> : vector<128x128xf32>
    %11 = tpu.matmul %9, %10, %cst_8 {dimension_numbers = #tpu.dot_dimension_numbers<[1], [0], [0], [1], [0, 0, 1, 1], [], []>} : vector<128x128xbf16>, vector<128x128xbf16>, vector<128x128xf32> -> vector<128x128xf32>
    %c0_9 = arith.constant 0 : index
    %c0_10 = arith.constant 0 : index
    %12 = vector.load %arg5[%c0_9, %c0_10] : memref<128x1xf32, #tpu.memory_space<vmem>>, vector<128x1xf32>
    %13 = vector.broadcast %12 : vector<128x1xf32> to vector<128x128xf32>
    %14 = arith.addf %11, %13 : vector<128x128xf32>
    %cst_11 = arith.constant 0.000000e+00 : f32
    %15 = vector.broadcast %cst_11 : f32 to vector<128x128xf32>
    %16 = arith.maximumf %14, %15 : vector<128x128xf32>
    %c0_12 = arith.constant 0 : index
    %c0_13 = arith.constant 0 : index
    %17 = vector.load %arg6[%c0_12, %c0_13] : memref<8x128xbf16, #tpu.memory_space<vmem>>, vector<8x128xbf16>
    %18 = arith.truncf %16 : vector<128x128xf32> to vector<128x128xbf16>
    %cst_14 = arith.constant dense<0.000000e+00> : vector<8x128xf32>
    %19 = tpu.matmul %17, %18, %cst_14 {dimension_numbers = #tpu.dot_dimension_numbers<[1], [0], [0], [1], [0, 0, 1, 1], [], []>} : vector<8x128xbf16>, vector<128x128xbf16>, vector<8x128xf32> -> vector<8x128xf32>
    %c0_15 = arith.constant 0 : index
    %c0_16 = arith.constant 0 : index
    %20 = vector.load %arg7[%c0_15, %c0_16] : memref<8x1xf32, #tpu.memory_space<vmem>>, vector<8x1xf32>
    %21 = vector.broadcast %20 : vector<8x1xf32> to vector<8x128xf32>
    %22 = arith.addf %19, %21 : vector<8x128xf32>
    %c0_17 = arith.constant 0 : index
    %c0_18 = arith.constant 0 : index
    %23 = vector.load %arg8[%c0_17, %c0_18] : memref<8x128xf32, #tpu.memory_space<vmem>>, vector<8x128xf32>
    tpu.vector_store %arg8[%c0_17, %c0_18], %22 {strides = array<i32>} : memref<8x128xf32, #tpu.memory_space<vmem>>, vector<8x128xf32>,
    return
  }
  func.func @transform_0(%arg0: i32) -> (i32, i32) {
    %c0_i32 = arith.constant 0 : i32
    %c0_i32_0 = arith.constant 0 : i32
    return %c0_i32, %arg0 : i32, i32
  }
  func.func @transform_1(%arg0: i32) -> (i32, i32) {
    %c0_i32 = arith.constant 0 : i32
    %c0_i32_0 = arith.constant 0 : i32
    %c0_i32_1 = arith.constant 0 : i32
    return %c0_i32, %c0_i32_0 : i32, i32
  }
  func.func @transform_2(%arg0: i32) -> (i32, i32) {
    %c0_i32 = arith.constant 0 : i32
    %c0_i32_0 = arith.constant 0 : i32
    %c0_i32_1 = arith.constant 0 : i32
    return %c0_i32, %c0_i32_0 : i32, i32
  }
  func.func @transform_3(%arg0: i32) -> (i32, i32) {
    %c0_i32 = arith.constant 0 : i32
    %c0_i32_0 = arith.constant 0 : i32
    %c0_i32_1 = arith.constant 0 : i32
    return %c0_i32, %c0_i32_0 : i32, i32
  }
  func.func @transform_4(%arg0: i32) -> (i32, i32) {
    %c0_i32 = arith.constant 0 : i32
    %c0_i32_0 = arith.constant 0 : i32
    %c0_i32_1 = arith.constant 0 : i32
    return %c0_i32, %c0_i32_0 : i32, i32
  }
  func.func @transform_5(%arg0: i32) -> (i32, i32) {
    %c0_i32 = arith.constant 0 : i32
    %c0_i32_0 = arith.constant 0 : i32
    %c0_i32_1 = arith.constant 0 : i32
    return %c0_i32, %c0_i32_0 : i32, i32
  }
  func.func @transform_6(%arg0: i32) -> (i32, i32) {
    %c0_i32 = arith.constant 0 : i32
    %c0_i32_0 = arith.constant 0 : i32
    %c0_i32_1 = arith.constant 0 : i32
    return %c0_i32, %c0_i32_0 : i32, i32
  }
  func.func @transform_7(%arg0: i32) -> (i32, i32) {
    %c0_i32 = arith.constant 0 : i32
    %c0_i32_0 = arith.constant 0 : i32
    return %c0_i32, %arg0 : i32, i32
  }
}

</mosaic_0001>

<bundles_post_ra>
// kernel: tabular_model_forward.1
= control target key start
LH: loop header
LB: loop body
LE: loop exit
PB: predicated region body
PF: predicated region fallthrough
CT: control target
= control target key end

     0   :  { %s1084_s24 = smov 0   ;;  %s1086_s25 = smov 0   ;;  %s1302_s0 = inlined_call_operand.vmem [shape: f32[16,256], index: 0, kind: input, shape index: {}]   ;;  %s1303_s1 = inlined_call_operand.vmem [shape: bf16[128,16], index: 1, kind: input, shape index: {}]   ;;  %s1304_s2 = inlined_call_operand.vmem [shape: f32[128,1], index: 2, kind: input, shape index: {}]   ;;  %s1305_s3 = inlined_call_operand.vmem [shape: bf16[128,128], index: 3, kind: input, shape index: {}]   ;;  %s1306_s4 = inlined_call_operand.vmem [shape: f32[128,1], index: 4, kind: input, shape index: {}]   ;;  %s1307_s5 = inlined_call_operand.vmem [shape: bf16[8,128], index: 5, kind: input, shape index: {}]   ;;  %s1308_s6 = inlined_call_operand.vmem [shape: f32[8,1], index: 6, kind: input, shape index: {}]   ;;  %s1309_s7 = inlined_call_operand.vmem [shape: f32[8,256], index: 7, kind: output, shape index: {}]  }
   0x1   :  { %s1088_s26 = smov 0  }
   0x2 LB: > { %s883_s27 = sadd.s32 4294967295, %s1041_s26   ;;  %s1101_s28 = sadd.s32 1, %s1041_s26   ;;  %s1041_s26 = sphi %s1088_s26, %s1312_s26   ;;  %s1037_s25 = sphi %s1086_s25, %s1311_s25   ;;  %s1033_s24 = sphi %s1084_s24, %s1310_s24  }
   0x3   : > { %s21_s29 = ssub.s32 %s1041_s26, %s1101_s28  ;;  %s24_s30 = sadd.s32 1, %s1037_s25 }
   0x4   : > { %p22_p0 = scmp.eq.s32.totalorder %s21_s29, 0  ;;  %p31_p1 = scmp.ne.s32.totalorder %s1037_s25, %s1033_s24 }
   0x5   : > { %p32_p2 = scmp.eq.s32.totalorder %s1041_s26, 0  ;;  %p886_p4 = scmp.ge.s32.totalorder %s1041_s26, 2 }
   0x6   : > { %s1110_s8 = scalar_select %p22_p0, %s1037_s25, %s24_s30  }
   0x7   : > { %p33_p3 = por %p32_p2, %p31_p1  ;;  %227 = sbr.rel (%p886_p4) target bundleno = 18 (0x12), region = 40 }
   0xc   : > { %230 = sbr.rel (!%p33_p3) target bundleno = 18 (0x12), region = 44  ;;  %s232_s9 = sand.u32 (%p33_p3), 1, %s1037_s25  }
   0xd   : > { %s888_s10 = sshll.u32 (%p33_p3), %s1041_s26, 3  ;;  %s887_s11 = sshll.u32 (%p33_p3), %s232_s9, 4 }
   0xe   : > { %s236_s14 = scalar_lea.vmem (%p33_p3), %s1302_s0, %s888_s10  ;;  %s234_s15 = scalar_lea.vmem (%p33_p3), [#allocation2], %s887_s11 }
   0xf   : > { %v267_v0 = vld [vmem:[%s236_s14] sm:$0xff] (%p33_p3)  ;;  %v269_v1 = vld [vmem:[%s236_s14 + $0x10] sm:$0xff] (%p33_p3) }
  0x10   : > { %268 = vst [vmem:[%s234_s15] sm:$0xff] (%p33_p3), %v267_v0 }
  0x11   : > { %270 = vst [vmem:[%s234_s15 + $0x8] sm:$0xff] %v269_v1 }
  0x12 PF: > { %p889_p5 = scmp.ge.s32.totalorder %s1041_s26, 1  ;;  %p275_p6 = scmp.lt.s32.totalorder %s1041_s26, 3 }
  0x14   : > { %p276_p7 = pnand %p889_p5, %p275_p6 }
  0x15   : > { %s282_s18 = sand.u32 (!%p276_p7), 1, %s1033_s24   ;;  %p312_p8 = scmp.lt.s32.totalorder (!%p276_p7), %s883_s27, 1 }
  0x16   : > { %279 = sbr.rel (%p276_p7) target bundleno = 643 (0x283), region = 82  ;;  %s890_s19 = sshll.u32 (!%p276_p7), %s282_s18, 4 }
  0x17   : > { %s284_s29 = scalar_lea.vmem (!%p276_p7), [#allocation2], %s890_s19 }
  0x1b   : > { %v350_v2 = vld [vmem:[%s1304_s2 + $0x70] sm:$0xff]  ;;  %v1043_v3 = vmov 0   ;;  %v348_v4 = vld [vmem:[%s1304_s2 + $0x60] sm:$0xff]  ;;  %v318_v7 = vld [vmem:[%s284_s29 + $0x8] sm:$0xff]  ;;  %vm472_vm0 = vcmask 130048   ;;  %s1314_s27 = smov (!%p312_p8, %s883_s27), 1 }
  0x1c   : > { %1016 = vset.pattern.permute.xlu0 %v1043_v3  ;;  %1018 = vset.pattern.permute.xlu2 %v1043_v3  ;;  %v346_v5 = vld [vmem:[%s1304_s2 + $0x50] sm:$0xff]  ;;  %v966_v9 = vld [vmem:[%s1303_s1] sm:$0xff]  ;;  %v351_v11 = vld [vmem:[%s1304_s2 + $0x78] sm:$0xff]  ;;  %s891_s11 = sshll.u32 %s1314_s27, 3 }
  0x1d   : > { %424 = vperm.xlu0 %1016, %v350_v2   ;;  %1017 = vset.pattern.permute.xlu1 %v1043_v3  ;;  %v317_v6 = vld [vmem:[%s284_s29] sm:$0xff]  ;;  %v349_v12 = vld [vmem:[%s1304_s2 + $0x68] sm:$0xff]  ;;  %v347_v13 = vld [vmem:[%s1304_s2 + $0x58] sm:$0xff]  ;;  %s315_s14 = scalar_lea.vmem %s1309_s7, %s891_s11 }
  0x1e   : > { %414 = vperm.xlu1 %1017, %v348_v4   ;;  %404 = vperm.xlu2 %1018, %v346_v5   ;;  %v319_v8 = vpack.c.bf16 %v318_v7, %v317_v6  ;;  %v972_v10 = vld [vmem:[%s1303_s1 + $0x30] sm:$0xff]  ;;  %v344_v14 = vld [vmem:[%s1304_s2 + $0x40] sm:$0xff]  ;;  %v345_v15 = vld [vmem:[%s1304_s2 + $0x48] sm:$0xff] }
  0x1f   : > { %v342_v16 = vld [vmem:[%s1304_s2 + $0x30] sm:$0xff]  ;;  %v967_v17 = vld [vmem:[%s1303_s1 + $0x8] sm:$0xff]  ;;  %v973_v18 = vld [vmem:[%s1303_s1 + $0x38] sm:$0xff] }
  0x20   : > { %504 = vmatpush.bf16.msra.mxu0 %v319_v8  ;;  %982 = vmatpush.bf16.msra.mxu2 %v319_v8  ;;  %v343_v19 = vld [vmem:[%s1304_s2 + $0x38] sm:$0xff]  ;;  %v341_v20 = vld [vmem:[%s1304_s2 + $0x28] sm:$0xff]  ;;  %v340_v21 = vld [vmem:[%s1304_s2 + $0x20] sm:$0xff] }
  0x21   : > { %v338_v22 = vld [vmem:[%s1304_s2 + $0x10] sm:$0xff]  ;;  %v339_v23 = vld [vmem:[%s1304_s2 + $0x18] sm:$0xff]  ;;  %v336_v24 = vld [vmem:[%s1304_s2] sm:$0xff] }
  0x22   : > { %v968_v25 = vld [vmem:[%s1303_s1 + $0x10] sm:$0xff]  ;;  %v337_v26 = vld [vmem:[%s1304_s2 + $0x8] sm:$0xff]  ;;  %v601_v28 = vld [vmem:[%s1306_s4 + $0x78] sm:$0xff] }
  0x23   : > { %924 = vmatmul.msk.bf16.vlgmr.msra.gmra.mxu0 %vm472_vm0, %v966_v9  ;;  %930 = vmatmul.msk.bf16.vlgmr.msra.gmra.mxu2 %vm472_vm0, %v972_v10  ;;  %v600_v27 = vld [vmem:[%s1306_s4 + $0x70] sm:$0xff]  ;;  %v598_v29 = vld [vmem:[%s1306_s4 + $0x60] sm:$0xff]  ;;  %v599_v30 = vld [vmem:[%s1306_s4 + $0x68] sm:$0xff] }
  0x24   : > { %v596_v31 = vld [vmem:[%s1306_s4 + $0x50] sm:$0xff]  ;;  %v969_v32 = vld [vmem:[%s1303_s1 + $0x18] sm:$0xff]  ;;  %v594_v34 = vld [vmem:[%s1306_s4 + $0x40] sm:$0xff] }
  0x25   : > { %429 = vperm.xlu0 %1016, %v351_v11   ;;  %v597_v33 = vld [vmem:[%s1306_s4 + $0x58] sm:$0xff]  ;;  %v595_v35 = vld [vmem:[%s1306_s4 + $0x48] sm:$0xff]  ;;  %v592_v36 = vld [vmem:[%s1306_s4 + $0x30] sm:$0xff] }
  0x26   : > { %419 = vperm.xlu1 %1017, %v349_v12   ;;  %409 = vperm.xlu2 %1018, %v347_v13   ;;  %v593_v37 = vld [vmem:[%s1306_s4 + $0x38] sm:$0xff]  ;;  %v590_v38 = vld [vmem:[%s1306_s4 + $0x20] sm:$0xff]  ;;  %v591_v40 = vld [vmem:[%s1306_s4 + $0x28] sm:$0xff] }
  0x27   : > { %v970_v39 = vld [vmem:[%s1303_s1 + $0x20] sm:$0xff]  ;;  %v588_v41 = vld [vmem:[%s1306_s4 + $0x10] sm:$0xff]  ;;  %v589_v42 = vld [vmem:[%s1306_s4 + $0x18] sm:$0xff] }
  0x28   : > { %v586_v43 = vld [vmem:[%s1306_s4] sm:$0xff]  ;;  %v587_v44 = vld [vmem:[%s1306_s4 + $0x8] sm:$0xff] }
  0x29   : > { %v804_v45 = vld [vmem:[%s1308_s6] sm:$0xff]  ;;  %v971_v46 = vld [vmem:[%s1303_s1 + $0x28] sm:$0xff] }
  0x2d   : > { %394 = vperm.xlu0 %1016, %v344_v14  }
  0x2e   : > { %399 = vperm.xlu1 %1017, %v345_v15   ;;  %384 = vperm.xlu2 %1018, %v342_v16  }
  0x33   : > { %925 = vmatmul.msk.bf16.gmra.mxu0 %vm472_vm0, %v967_v17  ;;  %931 = vmatmul.msk.bf16.gmra.mxu2 %vm472_vm0, %v973_v18 }
  0x35   : > { %389 = vperm.xlu0 %1016, %v343_v19  }
  0x36   : > { %379 = vperm.xlu2 %1018, %v341_v20   ;;  %374 = vperm.xlu1 %1017, %v340_v21  }
  0x3d   : > { %364 = vperm.xlu0 %1016, %v338_v22  }
  0x3e   : > { %369 = vperm.xlu1 %1017, %v339_v23   ;;  %354 = vperm.xlu2 %1018, %v336_v24  }
  0x43   : > { %926 = vmatmul.msk.bf16.gmra.mxu0 %vm472_vm0, %v968_v25 }
  0x45   : > { %359 = vperm.xlu0 %1016, %v337_v26  }
  0x46   : > { %674 = vperm.xlu1 %1017, %v600_v27   ;;  %679 = vperm.xlu2 %1018, %v601_v28  }
  0x4d   : > { %664 = vperm.xlu0 %1016, %v598_v29  }
  0x4e   : > { %669 = vperm.xlu1 %1017, %v599_v30   ;;  %654 = vperm.xlu2 %1018, %v596_v31  }
  0x53   : > { %927 = vmatmul.msk.bf16.gmra.mxu0 %vm472_vm0, %v969_v32 }
  0x55   : > { %659 = vperm.xlu0 %1016, %v597_v33  }
  0x56   : > { %644 = vperm.xlu1 %1017, %v594_v34   ;;  %649 = vperm.xlu2 %1018, %v595_v35  }
  0x5d   : > { %634 = vperm.xlu0 %1016, %v592_v36  }
  0x5e   : > { %639 = vperm.xlu1 %1017, %v593_v37   ;;  %624 = vperm.xlu2 %1018, %v590_v38  }
  0x63   : > { %928 = vmatmul.msk.bf16.gmra.mxu0 %vm472_vm0, %v970_v39 }
  0x65   : > { %629 = vperm.xlu0 %1016, %v591_v40  }
  0x66   : > { %614 = vperm.xlu1 %1017, %v588_v41   ;;  %619 = vperm.xlu2 %1018, %v589_v42  }
  0x6d   : > { %604 = vperm.xlu0 %1016, %v586_v43  }
  0x6e   : > { %609 = vperm.xlu1 %1017, %v587_v44   ;;  %807 = vperm.xlu2 %1018, %v804_v45  }
  0x73   : > { %929 = vmatmul.msk.bf16.gmra.mxu0 %vm472_vm0, %v971_v46 }
  0x78   : > { %v405_v47 = vpop.permute.xlu2 %404 }
  0x80   : > { %v410_v50 = vpop.permute.xlu2 %409 }
  0x88   : > { %v385_v53 = vpop.permute.xlu2 %384 }
  0x8f   : > { %v425_v48 = vpop.permute.xlu0 %424 }
  0x90   : > { %v415_v49 = vpop.permute.xlu1 %414  ;;  %v380_v59 = vpop.permute.xlu2 %379 }
  0x97   : > { %v430_v51 = vpop.permute.xlu0 %429 }
  0x98   : > { %v420_v52 = vpop.permute.xlu1 %419  ;;  %v355_v1 = vpop.permute.xlu2 %354 }
  0x9f   : > { %v395_v54 = vpop.permute.xlu0 %394 }
  0xa0   : > { %v506_v55 = vpop.f32.mrf.mxu0  ;;  %v400_v56 = vpop.permute.xlu1 %399 }
  0xa1   : > { %v507_v2 = vadd.f32 %v506_v55, %v355_v1 }
  0xa3   : > { %v546_v9 = vmax.f32 %v507_v2, 0.0 }
  0xa6   : > { %v536_v58 = vpop.f32.mrf.mxu2 }
  0xa7   : > { %v390_v57 = vpop.permute.xlu0 %389  ;;  %v537_v16 = vadd.f32 %v536_v58, %v415_v49  ;;  %v979_v58 = vld [vmem:[%s1305_s3 + $0x28] sm:$0xff] }
  0xa8   : > { %v508_v60 = vpop.f32.mrf.mxu0  ;;  %v375_v61 = vpop.permute.xlu1 %374 }
  0xa9   : > { %v558_v23 = vmax.f32 %v537_v16, 0.0 }
  0xae   : > { %v538_v63 = vpop.f32.mrf.mxu2 }
  0xaf   : > { %v365_v62 = vpop.permute.xlu0 %364  ;;  %v539_v17 = vadd.f32 %v538_v63, %v420_v52 }
  0xb0   : > { %v511_v0 = vpop.f32.mrf.mxu0  ;;  %v370_v3 = vpop.permute.xlu1 %369 }
  0xb1   : > { %v512_v6 = vadd.f32 %v511_v0, %v365_v62  ;;  %v559_v24 = vmax.f32 %v539_v17, 0.0  ;;  %v981_v62 = vld [vmem:[%s1305_s3 + $0x38] sm:$0xff] }
  0xb3   : > { %v548_v12 = vmax.f32 %v512_v6, 0.0  ;;  %v584_v27 = vpack.c.bf16 %v559_v24, %v558_v23 }
  0xb6   : > { %v541_v5 = vpop.f32.mrf.mxu2 }
  0xb7   : > { %v360_v4 = vpop.permute.xlu0 %359  ;;  %v542_v14 = vadd.f32 %v541_v5, %v425_v48 }
  0xb8   : > { %v509_v7 = vadd.f32 %v508_v60, %v360_v4  ;;  %v513_v8 = vpop.f32.mrf.mxu0  ;;  %v980_v60 = vld [vmem:[%s1305_s3 + $0x30] sm:$0xff] }
  0xb9   : > { %v514_v11 = vadd.f32 %v513_v8, %v370_v3  ;;  %v560_v20 = vmax.f32 %v542_v14, 0.0 }
  0xba   : > { %v547_v10 = vmax.f32 %v509_v7, 0.0  ;;  %v675_v7 = vpop.permute.xlu1 %674 }
  0xbb   : > { %v549_v13 = vmax.f32 %v514_v11, 0.0 }
  0xbc   : > { %v578_v15 = vpack.c.bf16 %v547_v10, %v546_v9  ;;  %v680_v9 = vpop.permute.xlu2 %679 }
  0xbd   : > { %v579_v18 = vpack.c.bf16 %v549_v13, %v548_v12 }
  0xbe   : > { %v543_v19 = vpop.f32.mrf.mxu2 }
  0xbf   : > { %v544_v21 = vadd.f32 %v543_v19, %v430_v51  ;;  %v665_v13 = vpop.permute.xlu0 %664 }
  0xc0   : > { %v516_v22 = vpop.f32.mrf.mxu0 }
  0xc1   : > { %v561_v25 = vmax.f32 %v544_v21, 0.0  ;;  %v517_v51 = vadd.f32 %v516_v22, %v375_v61  ;;  %v977_v61 = vld [vmem:[%s1305_s3 + $0x18] sm:$0xff] }
  0xc2   : > { %v670_v11 = vpop.permute.xlu1 %669 }
  0xc3   : > { %v585_v26 = vpack.c.bf16 %v561_v25, %v560_v20 }
  0xc4   : > { %v655_v14 = vpop.permute.xlu2 %654 }
  0xc5   : > { %730 = vmatpush.bf16.msra.mxu1 %v585_v26  ;;  %983 = vmatpush.bf16.msra.mxu3 %v585_v26 }
  0xc8   : > { %v518_v28 = vpop.f32.mrf.mxu0 }
  0xc9   : > { %731 = vmatpush.bf16.msra.mxu1 %v584_v27  ;;  %984 = vmatpush.bf16.msra.mxu3 %v584_v27  ;;  %v519_v46 = vadd.f32 %v518_v28, %v380_v59  ;;  %v976_v59 = vld [vmem:[%s1305_s3 + $0x10] sm:$0xff] }
  0xca   : > { %v645_v17 = vpop.permute.xlu1 %644 }
  0xcc   : > { %v650_v19 = vpop.permute.xlu2 %649 }
  0xd0   : > { %v521_v29 = vpop.f32.mrf.mxu0 }
  0xd1   : > { %v522_v44 = vadd.f32 %v521_v29, %v385_v53  ;;  %v974_v53 = vld [vmem:[%s1305_s3] sm:$0xff] }
  0xd2   : > { %v640_v28 = vpop.permute.xlu1 %639 }
  0xd3   : > { %v552_v52 = vmax.f32 %v522_v44, 0.0 }
  0xd8   : > { %v523_v30 = vpop.f32.mrf.mxu0 }
  0xd9   : > { %v524_v41 = vadd.f32 %v523_v30, %v390_v57  ;;  %v975_v57 = vld [vmem:[%s1305_s3 + $0x8] sm:$0xff] }
  0xdb   : > { %v553_v48 = vmax.f32 %v524_v41, 0.0 }
  0xdd   : > { %v581_v55 = vpack.c.bf16 %v553_v48, %v552_v52 }
  0xe0   : > { %v526_v31 = vpop.f32.mrf.mxu0 }
  0xe1   : > { %v527_v38 = vadd.f32 %v526_v31, %v395_v54 }
  0xe3   : > { %v554_v45 = vmax.f32 %v527_v38, 0.0  ;;  %v625_v38 = vpop.permute.xlu2 %624 }
  0xe8   : > { %v528_v32 = vpop.f32.mrf.mxu0 }
  0xe9   : > { %v529_v36 = vadd.f32 %v528_v32, %v400_v56  ;;  %v978_v56 = vld [vmem:[%s1305_s3 + $0x20] sm:$0xff] }
  0xeb   : > { %v555_v42 = vmax.f32 %v529_v36, 0.0 }
  0xed   : > { %v582_v49 = vpack.c.bf16 %v555_v42, %v554_v45  ;;  %v615_v45 = vpop.permute.xlu1 %614 }
  0xf0   : > { %v531_v33 = vpop.f32.mrf.mxu0 }
  0xf1   : > { %v532_v34 = vadd.f32 %v531_v33, %v405_v47  ;;  %v551_v47 = vmax.f32 %v519_v46, 0.0 }
  0xf3   : > { %v556_v39 = vmax.f32 %v532_v34, 0.0 }
  0xf8   : > { %v533_v35 = vpop.f32.mrf.mxu0 }
  0xf9   : > { %v534_v37 = vadd.f32 %v533_v35, %v410_v50  ;;  %v550_v50 = vmax.f32 %v517_v51, 0.0 }
  0xfb   : > { %v557_v40 = vmax.f32 %v534_v37, 0.0  ;;  %v580_v54 = vpack.c.bf16 %v551_v47, %v550_v50 }
  0xfd   : > { %v583_v43 = vpack.c.bf16 %v557_v40, %v556_v39 }
  0xff   : > { %732 = vmatpush.bf16.msra.mxu1 %v583_v43  ;;  %985 = vmatpush.bf16.msra.mxu3 %v583_v43 }
 0x103   : > { %733 = vmatpush.bf16.msra.mxu1 %v582_v49  ;;  %986 = vmatpush.bf16.msra.mxu3 %v582_v49 }
 0x107   : > { %734 = vmatpush.bf16.msra.mxu1 %v581_v55  ;;  %987 = vmatpush.bf16.msra.mxu3 %v581_v55 }
 0x10b   : > { %735 = vmatpush.bf16.msra.mxu1 %v580_v54  ;;  %988 = vmatpush.bf16.msra.mxu3 %v580_v54  ;;  %v620_v54 = vpop.permute.xlu2 %619 }
 0x10f   : > { %736 = vmatpush.bf16.msra.mxu1 %v579_v18  ;;  %989 = vmatpush.bf16.msra.mxu3 %v579_v18  ;;  %v660_v18 = vpop.permute.xlu0 %659 }
 0x113   : > { %737 = vmatpush.bf16.msra.mxu1 %v578_v15  ;;  %990 = vmatpush.bf16.msra.mxu3 %v578_v15 }
 0x116   : > { %738 = vmatmul.bf16.vlgmr.msra.gmra.mxu1 %v974_v53  ;;  %758 = vmatmul.bf16.vlgmr.msra.gmra.mxu3 %v978_v56 }
 0x117   : > { %v635_v32 = vpop.permute.xlu0 %634 }
 0x11f   : > { %v630_v49 = vpop.permute.xlu0 %629 }
 0x126   : > { %743 = vmatmul.bf16.gmra.mxu1 %v975_v57  ;;  %763 = vmatmul.bf16.gmra.mxu3 %v979_v58 }
 0x136   : > { %748 = vmatmul.bf16.gmra.mxu1 %v976_v59  ;;  %768 = vmatmul.bf16.gmra.mxu3 %v980_v60  ;;  %v610_v60 = vpop.permute.xlu1 %609 }
 0x146   : > { %753 = vmatmul.bf16.gmra.mxu1 %v977_v61  ;;  %773 = vmatmul.bf16.gmra.mxu3 %v981_v62 }
 0x193   : > { %v1276_v63 = vpop.f32.mrf.mxu1 }
 0x199   : > { %v759_v0 = vpop.f32.mrf.mxu3 }
 0x19a   : > { %v760_v40 = vadd.f32 %v759_v0, %v645_v17 }
 0x19b   : > { %v1278_v1 = vpop.f32.mrf.mxu1 }
 0x19c   : > { %v787_v46 = vmax.f32 %v760_v40, 0.0  ;;  %v742_v61 = vadd.f32 %v1278_v1, %v610_v60  ;;  %v808_v1 = vpop.permute.xlu2 %807 }
 0x1a1   : > { %v761_v2 = vpop.f32.mrf.mxu3 }
 0x1a2   : > { %v762_v35 = vadd.f32 %v761_v2, %v650_v19  ;;  %v605_v2 = vpop.permute.xlu0 %604 }
 0x1a3   : > { %v744_v3 = vpop.f32.mrf.mxu1 }
 0x1a4   : > { %v788_v42 = vmax.f32 %v762_v35, 0.0  ;;  %v745_v58 = vadd.f32 %v744_v3, %v615_v45  ;;  %v795_v3 = vld [vmem:[%s1307_s5] sm:$0xf] }
 0x1a6   : > { %v800_v47 = vpack.c.bf16 %v788_v42, %v787_v46 }
 0x1a9   : > { %v764_v4 = vpop.f32.mrf.mxu3 }
 0x1aa   : > { %v765_v33 = vadd.f32 %v764_v4, %v655_v14  ;;  %v740_v4 = vadd.f32 %v1276_v63, %v605_v2 }
 0x1ab   : > { %v746_v6 = vpop.f32.mrf.mxu1 }
 0x1ac   : > { %v789_v41 = vmax.f32 %v765_v33, 0.0  ;;  %v747_v53 = vadd.f32 %v746_v6, %v620_v54  ;;  %v779_v6 = vmax.f32 %v740_v4, 0.0 }
 0x1ae   : > { %v782_v62 = vmax.f32 %v747_v53, 0.0 }
 0x1b1   : > { %v766_v5 = vpop.f32.mrf.mxu3 }
 0x1b2   : > { %v767_v29 = vadd.f32 %v766_v5, %v660_v18  ;;  %v781_v5 = vmax.f32 %v745_v58, 0.0 }
 0x1b3   : > { %v749_v10 = vpop.f32.mrf.mxu1 }
 0x1b4   : > { %v790_v36 = vmax.f32 %v767_v29, 0.0  ;;  %v750_v55 = vadd.f32 %v749_v10, %v625_v38 }
 0x1b6   : > { %v801_v44 = vpack.c.bf16 %v790_v36, %v789_v41  ;;  %v783_v59 = vmax.f32 %v750_v55, 0.0 }
 0x1b9   : > { %v769_v8 = vpop.f32.mrf.mxu3 }
 0x1ba   : > { %v770_v25 = vadd.f32 %v769_v8, %v665_v13  ;;  %v797_v8 = vpack.c.bf16 %v782_v62, %v781_v5 }
 0x1bb   : > { %v751_v15 = vpop.f32.mrf.mxu1 }
 0x1bc   : > { %v791_v34 = vmax.f32 %v770_v25, 0.0  ;;  %v752_v51 = vadd.f32 %v751_v15, %v630_v49 }
 0x1be   : > { %v784_v56 = vmax.f32 %v752_v51, 0.0 }
 0x1c0   : > { %v798_v0 = vpack.c.bf16 %v784_v56, %v783_v59 }
 0x1c1   : > { %v771_v12 = vpop.f32.mrf.mxu3 }
 0x1c2   : > { %v772_v23 = vadd.f32 %v771_v12, %v670_v11 }
 0x1c3   : > { %v754_v21 = vpop.f32.mrf.mxu1 }
 0x1c4   : > { %v792_v30 = vmax.f32 %v772_v23, 0.0  ;;  %v755_v48 = vadd.f32 %v754_v21, %v635_v32 }
 0x1c6   : > { %v802_v37 = vpack.c.bf16 %v792_v30, %v791_v34  ;;  %v785_v50 = vmax.f32 %v755_v48, 0.0 }
 0x1c9   : > { %v774_v16 = vpop.f32.mrf.mxu3 }
 0x1ca   : > { %v775_v20 = vadd.f32 %v774_v16, %v675_v7  ;;  %v780_v7 = vmax.f32 %v742_v61, 0.0 }
 0x1cb   : > { %v756_v39 = vpop.f32.mrf.mxu1 }
 0x1cc   : > { %v793_v26 = vmax.f32 %v775_v20, 0.0  ;;  %v757_v43 = vadd.f32 %v756_v39, %v640_v28 }
 0x1ce   : > { %v786_v52 = vmax.f32 %v757_v43, 0.0 }
 0x1d0   : > { %v799_v57 = vpack.c.bf16 %v786_v52, %v785_v50 }
 0x1d1   : > { %v776_v22 = vpop.f32.mrf.mxu3 }
 0x1d2   : > { %v777_v24 = vadd.f32 %v776_v22, %v680_v9  ;;  %v796_v9 = vpack.c.bf16 %v780_v7, %v779_v6 }
 0x1d4   : > { %v794_v27 = vmax.f32 %v777_v24, 0.0 }
 0x1d6   : > { %v803_v31 = vpack.c.bf16 %v794_v27, %v793_v26 }
 0x1d8   : > { %810 = vmatpush.bf16.msrb.mxu2 %v803_v31 }
 0x1dc   : > { %811 = vmatpush.bf16.msrb.mxu2 %v802_v37 }
 0x1e0   : > { %812 = vmatpush.bf16.msrb.mxu2 %v801_v44 }
 0x1e4   : > { %813 = vmatpush.bf16.msrb.mxu2 %v800_v47 }
 0x1e8   : > { %814 = vmatpush.bf16.msrb.mxu2 %v799_v57 }
 0x1ec   : > { %815 = vmatpush.bf16.msrb.mxu2 %v798_v0 }
 0x1f0   : > { %816 = vmatpush.bf16.msrb.mxu2 %v797_v8 }
 0x1f4   : > { %817 = vmatpush.bf16.msrb.mxu2 %v796_v9 }
 0x1f7   : > { %818 = vmatmul.bf16.vlgmr.msrb.gmra.mxu2 %v795_v3 }
 0x27a   : > { %v819_v63 = vpop.f32.mrf.mxu2 }
 0x27b   : > { %v820_v10 = vadd.f32 %v819_v63, %v808_v1 }
 0x27d   : > { %823 = vst [vmem:[%s315_s14] sm:$0xff] %v820_v10 }
 0x282   : > { %v821_v11 = vpop.f32.mrf.mxu2 }
 0x283 PF: > { %p14_p9 = scmp.ge.s32.totalorder %s1101_s28, 4   ;;  %s1310_s24 = smov %s1037_s25 }
 0x284   : > { %s1311_s25 = smov %s1110_s8  ;;  %s1312_s26 = smov %s1101_s28 }
 0x285   :  { %16 = sbr.rel (!%p14_p9) target bundleno = 2 (0x2), region = 121 }

</bundles_post_ra>
